<compile_context>
chip_gen: v5e
topology: v5e:2x2
jax: 0.10.0
libtpu: 0.0.40
codegen_flags: <defaults>
</compile_context>

<pallas_src>
import functools
import math

import jax
import jax.numpy as jnp
from jax.experimental import pallas as pl
from jax.experimental.pallas import tpu as pltpu

_BN_EPS = 1e-5
_LANE = 128


# ---------------------------------------------------------------------------
# Small helpers
# ---------------------------------------------------------------------------
def _round_up(x, m):
    return (x + m - 1) // m * m


def _pad2(a, rows, cols):
    return jnp.pad(a, ((0, rows - a.shape[0]), (0, cols - a.shape[1])))


def _pick_tile(w, target=512):
    """Largest width tile <= target that divides the (128-padded) width."""
    for tn in (512, 384, 256, 128):
        if tn <= target and w % tn == 0:
            return tn
    return w


def _vmem_limit(*block_bytes):
    """Double-buffered block footprint + headroom, clamped to a safe range."""
    need = 2 * sum(int(b) for b in block_bytes) + (2 << 20)
    return int(min(max(need, 16 << 20), 48 << 20))


# ---------------------------------------------------------------------------
# Kernels
# ---------------------------------------------------------------------------
def _proj_bn_relu_kernel(x_ref, w_ref, o_ref):
    """One width-tile of: h = x @ W ; BatchNorm1d(batch stats, no affine) ; ReLU."""
    h = jnp.dot(x_ref[...], w_ref[...], preferred_element_type=jnp.float32)
    mean = jnp.mean(h, axis=0, keepdims=True)
    var = jnp.maximum(jnp.mean(h * h, axis=0, keepdims=True) - mean * mean, 0.0)
    h = (h - mean) * jax.lax.rsqrt(var + _BN_EPS)
    o_ref[...] = jnp.maximum(h, 0.0).astype(o_ref.dtype)


def _proj_bn_relu_fc_kernel(x_ref, w_ref, fcw_ref, fcb_ref, o_ref, acc_ref):
    """Last projection layer fused with the FC classifier.

    Grid axis j runs over width tiles of the last hidden layer (reduction axis
    for the logits): acc += ReLU(BN(x @ W[:, j])) @ FCW[j, :].
    """
    j = pl.program_id(0)

    h = jnp.dot(x_ref[...], w_ref[...], preferred_element_type=jnp.float32)
    mean = jnp.mean(h, axis=0, keepdims=True)
    var = jnp.maximum(jnp.mean(h * h, axis=0, keepdims=True) - mean * mean, 0.0)
    h = jnp.maximum((h - mean) * jax.lax.rsqrt(var + _BN_EPS), 0.0)

    @pl.when(j == 0)
    def _():
        acc_ref[...] = jnp.zeros_like(acc_ref)

    acc_ref[...] += jnp.dot(
        h.astype(jnp.bfloat16), fcw_ref[...], preferred_element_type=jnp.float32
    )

    @pl.when(j == pl.num_programs(0) - 1)
    def _():
        o_ref[...] = (acc_ref[...] + fcb_ref[...]).astype(o_ref.dtype)


# ---------------------------------------------------------------------------
# Wrappers
# ---------------------------------------------------------------------------
def _proj_bn_relu(x, w):
    B, F = x.shape
    W = w.shape[1]
    tn = _pick_tile(W)
    grid = (W // tn,)

    x_bytes = B * F * 2
    w_bytes = F * tn * 2
    o_bytes = B * tn * 2

    return pl.pallas_call(
        _proj_bn_relu_kernel,
        out_shape=jax.ShapeDtypeStruct((B, W), jnp.bfloat16),
        grid_spec=pltpu.PrefetchScalarGridSpec(
            num_scalar_prefetch=0,
            grid=grid,
            in_specs=[
                pl.BlockSpec((B, F), lambda j: (0, 0)),     # resident activation
                pl.BlockSpec((F, tn), lambda j: (0, j)),    # streamed weight tile
            ],
            out_specs=pl.BlockSpec((B, tn), lambda j: (0, j)),
        ),
        compiler_params=pltpu.CompilerParams(
            dimension_semantics=("parallel",),
            vmem_limit_bytes=_vmem_limit(x_bytes, w_bytes, o_bytes),
        ),
        cost_estimate=pl.CostEstimate(
            flops=2 * B * F * W,
            transcendentals=W,
            bytes_accessed=B * F * 2 + F * W * 2 + B * W * 2,
        ),
    )(x, w)


def _proj_bn_relu_fc(x, w, fc_w, fc_b):
    B, F = x.shape
    W = w.shape[1]
    C = fc_w.shape[1]
    tn = _pick_tile(W)
    grid = (W // tn,)

    x_bytes = B * F * 2
    w_bytes = F * tn * 2
    fcw_bytes = tn * C * 2
    fcb_bytes = C * 4
    o_bytes = B * C * 4
    acc_bytes = B * C * 4

    return pl.pallas_call(
        _proj_bn_relu_fc_kernel,
        out_shape=jax.ShapeDtypeStruct((B, C), jnp.float32),
        grid_spec=pltpu.PrefetchScalarGridSpec(
            num_scalar_prefetch=0,
            grid=grid,
            in_specs=[
                pl.BlockSpec((B, F), lambda j: (0, 0)),     # resident activation
                pl.BlockSpec((F, tn), lambda j: (0, j)),    # last proj weight tile
                pl.BlockSpec((tn, C), lambda j: (j, 0)),    # matching FC weight rows
                pl.BlockSpec((1, C), lambda j: (0, 0)),     # FC bias (f32)
            ],
            out_specs=pl.BlockSpec((B, C), lambda j: (0, 0)),
            scratch_shapes=[pltpu.VMEM((B, C), jnp.float32)],
        ),
        compiler_params=pltpu.CompilerParams(
            dimension_semantics=("arbitrary",),  # logits accumulate across width tiles
            vmem_limit_bytes=_vmem_limit(
                x_bytes, w_bytes, fcw_bytes, fcb_bytes, o_bytes, acc_bytes
            ),
        ),
        cost_estimate=pl.CostEstimate(
            flops=2 * B * F * W + 2 * B * W * C,
            transcendentals=W,
            bytes_accessed=B * F * 2 + F * W * 2 + W * C * 2 + C * 4 + B * C * 4,
        ),
    )(x, w, fc_w, fc_b)


# ---------------------------------------------------------------------------
# Model
# ---------------------------------------------------------------------------
def init_mlp_params(key, features, classes, widths):
    """Parameters mirroring the module's shapes, pre-padded to lane-dense
    (multiple-of-128) feature dims and stored in bf16 (weights) / f32 (bias)."""
    assert len(widths) >= 1, "at least one projection layer expected"
    params = {"proj_w": []}
    in_dim, in_pad = features, _round_up(features, _LANE)
    for width in widths:
        w_pad = _round_up(width, _LANE)
        key, sub = jax.random.split(key)
        # Random-feature projection ~ N(0, 1/in_dim) (Fastfood/RKS-style scale).
        w = jax.random.normal(sub, (in_dim, width), jnp.float32) / math.sqrt(in_dim)
        params["proj_w"].append(_pad2(w, in_pad, w_pad).astype(jnp.bfloat16))
        in_dim, in_pad = width, w_pad

    c_pad = _round_up(classes, _LANE)
    key, kw, kb = jax.random.split(key, 3)
    bound = 1.0 / math.sqrt(in_dim)
    fc_w = jax.random.uniform(kw, (in_dim, classes), jnp.float32, -bound, bound)
    fc_b = jax.random.uniform(kb, (1, classes), jnp.float32, -bound, bound)
    params["fc_w"] = _pad2(fc_w, in_pad, c_pad).astype(jnp.bfloat16)
    params["fc_b"] = _pad2(fc_b, 1, c_pad)  # kept f32 (added post-matmul)
    return params


@functools.partial(jax.jit, static_argnames=("classes",))
def mlp_forward(params, x, classes):
    """(Proj -> BN -> ReLU) * n -> Linear.  x: (batch, features) f32."""
    f_pad = params["proj_w"][0].shape[0]
    h = jnp.pad(x, ((0, 0), (0, f_pad - x.shape[1]))).astype(jnp.bfloat16)
    for w in params["proj_w"][:-1]:
        h = _proj_bn_relu(h, w)
    logits = _proj_bn_relu_fc(h, params["proj_w"][-1], params["fc_w"], params["fc_b"])
    return logits[:, :classes]


# ---------------------------------------------------------------------------
# Pure-JAX reference with the identical precision flow (bf16 MXU operands,
# f32 accumulation, f32 BN epilogue) for verification.
# ---------------------------------------------------------------------------
def mlp_forward_ref(params, x, classes):
    f_pad = params["proj_w"][0].shape[0]
    h = jnp.pad(x, ((0, 0), (0, f_pad - x.shape[1]))).astype(jnp.bfloat16)
    for w in params["proj_w"]:
        z = jnp.dot(h, w, preferred_element_type=jnp.float32)
        mean = jnp.mean(z, axis=0, keepdims=True)
        var = jnp.maximum(jnp.mean(z * z, axis=0, keepdims=True) - mean * mean, 0.0)
        h = jnp.maximum((z - mean) * jax.lax.rsqrt(var + _BN_EPS), 0.0).astype(
            jnp.bfloat16
        )
    logits = jnp.dot(h, params["fc_w"], preferred_element_type=jnp.float32)
    logits = logits + params["fc_b"]
    return logits[:, :classes]


if __name__ == "__main__":
    batch = 8
    features = 32
    widths = [64, 64]
    classes = 10

    key = jax.random.PRNGKey(0)
    key, kx = jax.random.split(key)
    x = jax.random.normal(kx, (batch, features), jnp.float32)

    params = init_mlp_params(key, features, classes, widths)

    logits = mlp_forward(params, x, classes)
    logits = jax.block_until_ready(logits)

    ref = mlp_forward_ref(params, x, classes)
    assert logits.shape == (batch, classes)
    assert jnp.allclose(logits, ref, atol=2e-2, rtol=2e-2), "mismatch vs reference"

    print("KERNEL_OK")
</pallas_src>

<mosaic_0001>
module attributes {stable_mosaic.version = 11 : i64} {
  func.func @_proj_bn_relu_kernel(%arg0: i32, %arg1: memref<8x128xbf16, #tpu.memory_space<vmem>>, %arg2: memref<128x128xbf16, #tpu.memory_space<vmem>>, %arg3: memref<8x128xbf16, #tpu.memory_space<vmem>>) attributes {dimension_semantics = [#tpu.dimension_semantics<parallel>], iteration_bounds = array<i64: 1>, scalar_prefetch = 0 : i64, scratch_operands = 0 : i64, tpu.core_type = #tpu.core_type<tc>, window_params = [{pipeline_mode = #tpu.pipeline_mode<synchronous>, transform_indices = @transform_0, window_bounds = array<i64: 8, 128>}, {transform_indices = @transform_1, window_bounds = array<i64: 128, 128>}, {transform_indices = @transform_2, window_bounds = array<i64: 8, 128>}]} {
    %c0 = arith.constant 0 : index
    %c0_0 = arith.constant 0 : index
    %0 = vector.load %arg1[%c0, %c0_0] : memref<8x128xbf16, #tpu.memory_space<vmem>>, vector<8x128xbf16>
    %c0_1 = arith.constant 0 : index
    %c0_2 = arith.constant 0 : index
    %1 = vector.load %arg2[%c0_1, %c0_2] : memref<128x128xbf16, #tpu.memory_space<vmem>>, vector<128x128xbf16>
    %cst = arith.constant dense<0.000000e+00> : vector<8x128xf32>
    %2 = tpu.matmul %0, %1, %cst {dimension_numbers = #tpu.dot_dimension_numbers<[1], [0], [0], [1], [0, 0, 1, 1], [], []>} : vector<8x128xbf16>, vector<128x128xbf16>, vector<8x128xf32> -> vector<8x128xf32>
    %cst_3 = arith.constant dense<0.000000e+00> : vector<128xf32>
    %3 = vector.multi_reduction <add>, %2, %cst_3 [0] : vector<8x128xf32> to vector<128xf32>
    %4 = vector.shape_cast %3 : vector<128xf32> to vector<1x128xf32>
    %cst_4 = arith.constant 8.000000e+00 : f32
    %5 = vector.broadcast %cst_4 : f32 to vector<1x128xf32>
    %6 = arith.divf %4, %5 : vector<1x128xf32>
    %7 = arith.mulf %2, %2 : vector<8x128xf32>
    %cst_5 = arith.constant dense<0.000000e+00> : vector<128xf32>
    %8 = vector.multi_reduction <add>, %7, %cst_5 [0] : vector<8x128xf32> to vector<128xf32>
    %9 = vector.shape_cast %8 : vector<128xf32> to vector<1x128xf32>
    %cst_6 = arith.constant 8.000000e+00 : f32
    %10 = vector.broadcast %cst_6 : f32 to vector<1x128xf32>
    %11 = arith.divf %9, %10 : vector<1x128xf32>
    %12 = arith.mulf %6, %6 : vector<1x128xf32>
    %13 = arith.subf %11, %12 : vector<1x128xf32>
    %cst_7 = arith.constant 0.000000e+00 : f32
    %14 = vector.broadcast %cst_7 : f32 to vector<1x128xf32>
    %15 = arith.maximumf %13, %14 : vector<1x128xf32>
    %16 = vector.broadcast %6 : vector<1x128xf32> to vector<8x128xf32>
    %17 = arith.subf %2, %16 : vector<8x128xf32>
    %cst_8 = arith.constant 9.99999974E-6 : f32
    %18 = vector.broadcast %cst_8 : f32 to vector<1x128xf32>
    %19 = arith.addf %15, %18 : vector<1x128xf32>
    %20 = math.rsqrt %19 : vector<1x128xf32>
    %21 = vector.broadcast %20 : vector<1x128xf32> to vector<8x128xf32>
    %22 = arith.mulf %17, %21 : vector<8x128xf32>
    %cst_9 = arith.constant 0.000000e+00 : f32
    %23 = vector.broadcast %cst_9 : f32 to vector<8x128xf32>
    %24 = arith.maximumf %22, %23 : vector<8x128xf32>
    %25 = arith.truncf %24 : vector<8x128xf32> to vector<8x128xbf16>
    %c0_10 = arith.constant 0 : index
    %c0_11 = arith.constant 0 : index
    %26 = vector.load %arg3[%c0_10, %c0_11] : memref<8x128xbf16, #tpu.memory_space<vmem>>, vector<8x128xbf16>
    tpu.vector_store %arg3[%c0_10, %c0_11], %25 {strides = array<i32>} : memref<8x128xbf16, #tpu.memory_space<vmem>>, vector<8x128xbf16>,
    return
  }
  func.func @transform_0(%arg0: i32) -> (i32, i32) {
    %c0_i32 = arith.constant 0 : i32
    %c0_i32_0 = arith.constant 0 : i32
    %c0_i32_1 = arith.constant 0 : i32
    return %c0_i32, %c0_i32_0 : i32, i32
  }
  func.func @transform_1(%arg0: i32) -> (i32, i32) {
    %c0_i32 = arith.constant 0 : i32
    %c0_i32_0 = arith.constant 0 : i32
    return %c0_i32, %arg0 : i32, i32
  }
  func.func @transform_2(%arg0: i32) -> (i32, i32) {
    %c0_i32 = arith.constant 0 : i32
    %c0_i32_0 = arith.constant 0 : i32
    return %c0_i32, %arg0 : i32, i32
  }
}

module attributes {stable_mosaic.version = 11 : i64} {
  func.func @_proj_bn_relu_fc_kernel(%arg0: i32, %arg1: memref<8x128xbf16, #tpu.memory_space<vmem>>, %arg2: memref<128x128xbf16, #tpu.memory_space<vmem>>, %arg3: memref<128x128xbf16, #tpu.memory_space<vmem>>, %arg4: memref<1x128xf32, #tpu.memory_space<vmem>>, %arg5: memref<8x128xf32, #tpu.memory_space<vmem>>, %arg6: memref<8x128xf32, #tpu.memory_space<vmem>>) attributes {dimension_semantics = [#tpu.dimension_semantics<arbitrary>], iteration_bounds = array<i64: 1>, scalar_prefetch = 0 : i64, scratch_operands = 1 : i64, tpu.core_type = #tpu.core_type<tc>, window_params = [{pipeline_mode = #tpu.pipeline_mode<synchronous>, transform_indices = @transform_0, window_bounds = array<i64: 8, 128>}, {transform_indices = @transform_1, window_bounds = array<i64: 128, 128>}, {transform_indices = @transform_2, window_bounds = array<i64: 128, 128>}, {pipeline_mode = #tpu.pipeline_mode<synchronous>, transform_indices = @transform_3, window_bounds = array<i64: 1, 128>}, {pipeline_mode = #tpu.pipeline_mode<synchronous>, transform_indices = @transform_4, window_bounds = array<i64: 8, 128>}]} {
    %c0 = arith.constant 0 : index
    %c0_0 = arith.constant 0 : index
    %0 = vector.load %arg1[%c0, %c0_0] : memref<8x128xbf16, #tpu.memory_space<vmem>>, vector<8x128xbf16>
    %c0_1 = arith.constant 0 : index
    %c0_2 = arith.constant 0 : index
    %1 = vector.load %arg2[%c0_1, %c0_2] : memref<128x128xbf16, #tpu.memory_space<vmem>>, vector<128x128xbf16>
    %cst = arith.constant dense<0.000000e+00> : vector<8x128xf32>
    %2 = tpu.matmul %0, %1, %cst {dimension_numbers = #tpu.dot_dimension_numbers<[1], [0], [0], [1], [0, 0, 1, 1], [], []>} : vector<8x128xbf16>, vector<128x128xbf16>, vector<8x128xf32> -> vector<8x128xf32>
    %cst_3 = arith.constant dense<0.000000e+00> : vector<128xf32>
    %3 = vector.multi_reduction <add>, %2, %cst_3 [0] : vector<8x128xf32> to vector<128xf32>
    %4 = vector.shape_cast %3 : vector<128xf32> to vector<1x128xf32>
    %cst_4 = arith.constant 8.000000e+00 : f32
    %5 = vector.broadcast %cst_4 : f32 to vector<1x128xf32>
    %6 = arith.divf %4, %5 : vector<1x128xf32>
    %7 = arith.mulf %2, %2 : vector<8x128xf32>
    %cst_5 = arith.constant dense<0.000000e+00> : vector<128xf32>
    %8 = vector.multi_reduction <add>, %7, %cst_5 [0] : vector<8x128xf32> to vector<128xf32>
    %9 = vector.shape_cast %8 : vector<128xf32> to vector<1x128xf32>
    %cst_6 = arith.constant 8.000000e+00 : f32
    %10 = vector.broadcast %cst_6 : f32 to vector<1x128xf32>
    %11 = arith.divf %9, %10 : vector<1x128xf32>
    %12 = arith.mulf %6, %6 : vector<1x128xf32>
    %13 = arith.subf %11, %12 : vector<1x128xf32>
    %cst_7 = arith.constant 0.000000e+00 : f32
    %14 = vector.broadcast %cst_7 : f32 to vector<1x128xf32>
    %15 = arith.maximumf %13, %14 : vector<1x128xf32>
    %16 = vector.broadcast %6 : vector<1x128xf32> to vector<8x128xf32>
    %17 = arith.subf %2, %16 : vector<8x128xf32>
    %cst_8 = arith.constant 9.99999974E-6 : f32
    %18 = vector.broadcast %cst_8 : f32 to vector<1x128xf32>
    %19 = arith.addf %15, %18 : vector<1x128xf32>
    %20 = math.rsqrt %19 : vector<1x128xf32>
    %21 = vector.broadcast %20 : vector<1x128xf32> to vector<8x128xf32>
    %22 = arith.mulf %17, %21 : vector<8x128xf32>
    %cst_9 = arith.constant 0.000000e+00 : f32
    %23 = vector.broadcast %cst_9 : f32 to vector<8x128xf32>
    %24 = arith.maximumf %22, %23 : vector<8x128xf32>
    %c0_i32 = arith.constant 0 : i32
    %25 = arith.cmpi eq, %arg0, %c0_i32 : i32
    %26 = arith.extui %25 : i1 to i32
    %c0_i32_10 = arith.constant 0 : i32
    %27 = arith.cmpi ne, %26, %c0_i32_10 : i32
    scf.if %27 {
      %cst_20 = arith.constant 0.000000e+00 : f32
      %37 = vector.broadcast %cst_20 : f32 to vector<8x128xf32>
      %c0_21 = arith.constant 0 : index
      %c0_22 = arith.constant 0 : index
      %38 = vector.load %arg6[%c0_21, %c0_22] : memref<8x128xf32, #tpu.memory_space<vmem>>, vector<8x128xf32>
      tpu.vector_store %arg6[%c0_21, %c0_22], %37 {strides = array<i32>} : memref<8x128xf32, #tpu.memory_space<vmem>>, vector<8x128xf32>,
    } else {
    }
    %c0_11 = arith.constant 0 : index
    %c0_12 = arith.constant 0 : index
    %28 = vector.load %arg6[%c0_11, %c0_12] : memref<8x128xf32, #tpu.memory_space<vmem>>, vector<8x128xf32>
    %29 = arith.truncf %24 : vector<8x128xf32> to vector<8x128xbf16>
    %c0_13 = arith.constant 0 : index
    %c0_14 = arith.constant 0 : index
    %30 = vector.load %arg3[%c0_13, %c0_14] : memref<128x128xbf16, #tpu.memory_space<vmem>>, vector<128x128xbf16>
    %cst_15 = arith.constant dense<0.000000e+00> : vector<8x128xf32>
    %31 = tpu.matmul %29, %30, %cst_15 {dimension_numbers = #tpu.dot_dimension_numbers<[1], [0], [0], [1], [0, 0, 1, 1], [], []>} : vector<8x128xbf16>, vector<128x128xbf16>, vector<8x128xf32> -> vector<8x128xf32>
    %32 = arith.addf %28, %31 : vector<8x128xf32>
    %c0_16 = arith.constant 0 : index
    %c0_17 = arith.constant 0 : index
    %33 = vector.load %arg6[%c0_16, %c0_17] : memref<8x128xf32, #tpu.memory_space<vmem>>, vector<8x128xf32>
    tpu.vector_store %arg6[%c0_16, %c0_17], %32 {strides = array<i32>} : memref<8x128xf32, #tpu.memory_space<vmem>>, vector<8x128xf32>,
    %c0_i32_18 = arith.constant 0 : i32
    %34 = arith.cmpi eq, %arg0, %c0_i32_18 : i32
    %35 = arith.extui %34 : i1 to i32
    %c0_i32_19 = arith.constant 0 : i32
    %36 = arith.cmpi ne, %35, %c0_i32_19 : i32
    scf.if %36 {
      %c0_20 = arith.constant 0 : index
      %c0_21 = arith.constant 0 : index
      %37 = vector.load %arg6[%c0_20, %c0_21] : memref<8x128xf32, #tpu.memory_space<vmem>>, vector<8x128xf32>
      %c0_22 = arith.constant 0 : index
      %c0_23 = arith.constant 0 : index
      %38 = vector.load %arg4[%c0_22, %c0_23] : memref<1x128xf32, #tpu.memory_space<vmem>>, vector<1x128xf32>
      %39 = vector.broadcast %38 : vector<1x128xf32> to vector<8x128xf32>
      %40 = arith.addf %37, %39 : vector<8x128xf32>
      %c0_24 = arith.constant 0 : index
      %c0_25 = arith.constant 0 : index
      %41 = vector.load %arg5[%c0_24, %c0_25] : memref<8x128xf32, #tpu.memory_space<vmem>>, vector<8x128xf32>
      tpu.vector_store %arg5[%c0_24, %c0_25], %40 {strides = array<i32>} : memref<8x128xf32, #tpu.memory_space<vmem>>, vector<8x128xf32>,
    } else {
    }
    return
  }
  func.func @transform_0(%arg0: i32) -> (i32, i32) {
    %c0_i32 = arith.constant 0 : i32
    %c0_i32_0 = arith.constant 0 : i32
    %c0_i32_1 = arith.constant 0 : i32
    return %c0_i32, %c0_i32_0 : i32, i32
  }
  func.func @transform_1(%arg0: i32) -> (i32, i32) {
    %c0_i32 = arith.constant 0 : i32
    %c0_i32_0 = arith.constant 0 : i32
    return %c0_i32, %arg0 : i32, i32
  }
  func.func @transform_2(%arg0: i32) -> (i32, i32) {
    %c0_i32 = arith.constant 0 : i32
    %c0_i32_0 = arith.constant 0 : i32
    return %arg0, %c0_i32 : i32, i32
  }
  func.func @transform_3(%arg0: i32) -> (i32, i32) {
    %c0_i32 = arith.constant 0 : i32
    %c0_i32_0 = arith.constant 0 : i32
    %c0_i32_1 = arith.constant 0 : i32
    return %c0_i32, %c0_i32_0 : i32, i32
  }
  func.func @transform_4(%arg0: i32) -> (i32, i32) {
    %c0_i32 = arith.constant 0 : i32
    %c0_i32_0 = arith.constant 0 : i32
    %c0_i32_1 = arith.constant 0 : i32
    return %c0_i32, %c0_i32_0 : i32, i32
  }
}

</mosaic_0001>

<bundles_post_ra>
// kernel: mlp_forward.3
= control target key start
LH: loop header
LB: loop body
LE: loop exit
PB: predicated region body
PF: predicated region fallthrough
CT: control target
= control target key end

     0   :  { %9 = vsyncpa [#allocation4], 0  ;;  %s472_s0 = inlined_call_operand.vmem [shape: bf16[8,128], index: 0, kind: input, shape index: {}]   ;;  %s473_s1 = inlined_call_operand.vmem [shape: bf16[128,128], index: 1, kind: input, shape index: {}]   ;;  %s474_s2 = inlined_call_operand.hbm [shape: bf16[128,128], index: 2, kind: input, shape index: {}]   ;;  %s475_s3 = inlined_call_operand.vmem [shape: f32[1,128], index: 3, kind: input, shape index: {}]   ;;  %s476_s4 = inlined_call_operand.hbm [shape: f32[8,128], index: 4, kind: output, shape index: {}]  }
   0x1   :  { %10 = vsyncpa [#allocation5], 0  ;;  %s19_s17 = sshll.u32 %s474_s2, 4  ;;  %s406_s18 = smov [#allocation3]   ;;  %s20_s17 = int_to_ptr.hbm [resolvable:$true] %s19_s17 }
   0x2   :  { %s21_s19 = sshll.u32 %s406_s18, 4  ;;  %s407_s20 = smov 64   ;;  %s22_s19 = int_to_ptr.vmem [resolvable:$true] %s21_s19 }
   0x3   :  { %s408_s21 = smov 4  }
   0x4   :  { %27 = dma.hbm_to_vmem [thread:$0]  %s20_s17, 1024, %s22_s19, [#allocation4], %s407_s20, %s407_s20, %s408_s21  }
   0x5   :  { %402 = dma.done.wait [#allocation4], 1024  }
   0x6   :  { %403 = vsyncadd [#allocation4], 4294966272  ;;  %v335_v0 = vld [vmem:[%s473_s1 + $0x38] sm:$0xff]  ;;  %v334_v1 = vld [vmem:[%s473_s1 + $0x30] sm:$0xff]  ;;  %v409_v12 = vmov 8.0   ;;  %s410_s13 = smov [#allocation6]  }
   0x7   :  { %99 = vmatpush.bf16.msra.mxu0 %v335_v0  ;;  %v333_v2 = vld [vmem:[%s473_s1 + $0x28] sm:$0xff]  ;;  %v332_v3 = vld [vmem:[%s473_s1 + $0x20] sm:$0xff]  ;;  %v331_v4 = vld [vmem:[%s473_s1 + $0x18] sm:$0xff]  ;;  %350 = vrcp.f32 %v409_v12  ;;  %s252_s14 = sshll.u32 %s410_s13, 4  ;;  %s254_s17 = sshll.u32 %s476_s4, 4  ;;  %s253_s14 = int_to_ptr.vmem [resolvable:$true] %s252_s14  ;;  %s255_s17 = int_to_ptr.hbm [resolvable:$true] %s254_s17 }
   0x8   :  { %v330_v5 = vld [vmem:[%s473_s1 + $0x10] sm:$0xff]  ;;  %v329_v6 = vld [vmem:[%s473_s1 + $0x8] sm:$0xff]  ;;  %v328_v7 = vld [vmem:[%s473_s1] sm:$0xff] }
   0x9   :  { %v34_v8 = vld [vmem:[%s472_s0] sm:$0xf]  ;;  %v343_v9 = vld [vmem:[#allocation3 + $0x38] sm:$0xff]  ;;  %v342_v10 = vld [vmem:[#allocation3 + $0x30] sm:$0xff] }
   0xa   :  { %222 = vmatpush.bf16.msra.mxu1 %v343_v9  ;;  %v341_v11 = vld [vmem:[#allocation3 + $0x28] sm:$0xff]  ;;  %v340_v13 = vld [vmem:[#allocation3 + $0x20] sm:$0xff]  ;;  %v339_v15 = vld [vmem:[#allocation3 + $0x18] sm:$0xff] }
   0xb   :  { %100 = vmatpush.bf16.msra.mxu0 %v334_v1  ;;  %v338_v17 = vld [vmem:[#allocation3 + $0x10] sm:$0xff]  ;;  %v337_v22 = vld [vmem:[#allocation3 + $0x8] sm:$0xff]  ;;  %v336_v28 = vld [vmem:[#allocation3] sm:$0xff] }
   0xc   :  { %v349_v56 = vld [vmem:[%s475_s3] ss:$0 sm:$0xff] }
   0xd   :  { %v351_v14 = vpop.eup %350 }
   0xe   :  { %223 = vmatpush.bf16.msra.mxu1 %v342_v10  ;;  %v119_v16 = vmul.f32 8.0, %v351_v14  ;;  %vm123_vm0 = vweird.f32 %v351_v14 }
   0xf   :  { %101 = vmatpush.bf16.msra.mxu0 %v333_v2 }
  0x10   :  { %v120_v18 = vsub.f32 1.0, %v119_v16 }
  0x12   :  { %224 = vmatpush.bf16.msra.mxu1 %v341_v11  ;;  %v121_v23 = vmul.f32 %v351_v14, %v120_v18 }
  0x13   :  { %102 = vmatpush.bf16.msra.mxu0 %v332_v3 }
  0x14   :  { %v122_v29 = vadd.f32 %v351_v14, %v121_v23 }
  0x16   :  { %225 = vmatpush.bf16.msra.mxu1 %v340_v13  ;;  %v124_v35 = vsel %vm123_vm0, %v351_v14, %v122_v29 }
  0x17   :  { %103 = vmatpush.bf16.msra.mxu0 %v331_v4 }
  0x1a   :  { %226 = vmatpush.bf16.msra.mxu1 %v339_v15 }
  0x1b   :  { %104 = vmatpush.bf16.msra.mxu0 %v330_v5 }
  0x1e   :  { %227 = vmatpush.bf16.msra.mxu1 %v338_v17 }
  0x1f   :  { %105 = vmatpush.bf16.msra.mxu0 %v329_v6 }
  0x22   :  { %228 = vmatpush.bf16.msra.mxu1 %v337_v22 }
  0x23   :  { %106 = vmatpush.bf16.msra.mxu0 %v328_v7 }
  0x26   :  { %107 = vmatmul.bf16.vlgmr.msra.gmra.mxu0 %v34_v8  ;;  %229 = vmatpush.bf16.msra.mxu1 %v336_v28 }
  0xa3   :  { %v108_v19 = vpop.f32.mrf.mxu0 }
  0xa4   :  { %v112_v20 = vrot.slane %v108_v19, 4  ;;  %v126_v21 = vmul.f32 %v108_v19, %v108_v19 }
  0xa6   :  { %v113_v24 = vadd.f32 %v112_v20, %v108_v19  ;;  %v127_v25 = vrot.slane %v126_v21, 4 }
  0xa8   :  { %v114_v26 = vrot.slane %v113_v24, 2  ;;  %v128_v27 = vadd.f32 %v127_v25, %v126_v21 }
  0xaa   :  { %v115_v30 = vadd.f32 %v114_v26, %v113_v24  ;;  %v129_v31 = vrot.slane %v128_v27, 2 }
  0xab   :  { %v110_v32 = vpop.f32.mrf.mxu0 }
  0xac   :  { %v116_v33 = vrot.slane %v115_v30, 1  ;;  %v130_v34 = vadd.f32 %v129_v31, %v128_v27 }
  0xae   :  { %v131_v36 = vrot.slane %v130_v34, 1  ;;  %v117_v37 = vadd.f32 %v116_v33, %v115_v30 }
  0xb0   :  { %v125_v38 = vmul.f32 %v124_v35, %v117_v37  ;;  %v132_v39 = vadd.f32 %v131_v36, %v130_v34 }
  0xb2   :  { %v133_v40 = vmul.f32 %v132_v39, %v124_v35  ;;  %v134_v41 = vmul.f32 %v125_v38, %v125_v38  ;;  %v137_v51 = vsub.f32 %v108_v19, %v125_v38 }
  0xb4   :  { %v135_v42 = vsub.f32 %v133_v40, %v134_v41 }
  0xb6   :  { %v136_v43 = vmax.f32 %v135_v42, 0.0 }
  0xb8   :  { %v138_v44 = vadd.f32 1e-05, %v136_v43 }
  0xba   :  { %352 = vrsqrt.f32 %v138_v44  ;;  %vm145_vm2 = vweird.f32 %v138_v44 }
  0xc0   :  { %v353_v45 = vpop.eup %352 }
  0xc1   :  { %v140_v46 = vmul.f32 %v353_v45, %v138_v44  ;;  %vm146_vm1 = vweird.f32 %v353_v45 }
  0xc2   :  { %vm147_vm3 = vmor %vm145_vm2, %vm146_vm1 }
  0xc3   :  { %v141_v47 = vmul.f32 %v353_v45, %v140_v46 }
  0xc5   :  { %v142_v48 = vmul.f32 0.5, %v141_v47 }
  0xc7   :  { %v143_v49 = vsub.f32 1.5, %v142_v48 }
  0xc9   :  { %v144_v50 = vmul.f32 %v353_v45, %v143_v49 }
  0xcb   :  { %v148_v52 = vsel %vm147_vm3, %v353_v45, %v144_v50 }
  0xcc   :  { %v149_v53 = vmul.f32 %v148_v52, %v137_v51 }
  0xce   :  { %v150_v54 = vmax.f32 %v149_v53, 0.0 }
  0xd0   :  { %v157_v55 = vpack.c.bf16 %v150_v54, %v150_v54 }
  0xd2   :  { %230 = vmatmul.bf16.vlgmr.msra.gmra.mxu1 %v157_v55 }
 0x14f   :  { %v231_v57 = vpop.f32.mrf.mxu1 }
 0x150   :  { %v245_v58 = vadd.f32 %v349_v56, %v231_v57 }
 0x152   :  { %246 = vst [vmem:[#allocation6] sm:$0xff] %v245_v58 }
 0x153   :  { %257 = dma.vmem_to_hbm [thread:$0]  %s253_s14, 128, %s255_s17, [#allocation5]  }
 0x157   :  { %v233_v59 = vpop.f32.mrf.mxu1 }
 0x158   :  { %404 = dma.done.wait [#allocation5], 128  }
 0x159   :  { %405 = vsyncadd [#allocation5], 4294967168 }
 0x15a   :  { %262 = vsyncpa [#allocation4], 1 }
 0x15b   :  { %263 = vsyncpa [#allocation5], 1 }

// kernel: mlp_forward.2
= control target key start
LH: loop header
LB: loop body
LE: loop exit
PB: predicated region body
PF: predicated region fallthrough
CT: control target
= control target key end

     0   :  { %7 = vsyncpa [#allocation3], 0  ;;  %s225_s12 = smov [#allocation2]   ;;  %s226_s14 = smov 64   ;;  %s253_s0 = inlined_call_operand.vmem [shape: bf16[8,128], index: 0, kind: input, shape index: {}]   ;;  %s254_s1 = inlined_call_operand.hbm [shape: bf16[128,128], index: 1, kind: input, shape index: {}]   ;;  %s255_s2 = inlined_call_operand.vmem [shape: bf16[8,128], index: 2, kind: output, shape index: {}]  }
   0x1   :  { %s14_s11 = sshll.u32 %s254_s1, 4  ;;  %s16_s13 = sshll.u32 %s225_s12, 4  ;;  %s15_s11 = int_to_ptr.hbm [resolvable:$true] %s14_s11  ;;  %s17_s13 = int_to_ptr.vmem [resolvable:$true] %s16_s13 }
   0x2   :  { %s227_s15 = smov 4  }
   0x3   :  { %22 = dma.hbm_to_vmem [thread:$0]  %s15_s11, 1024, %s17_s13, [#allocation3], %s226_s14, %s226_s14, %s227_s15  }
   0x4   :  { %223 = dma.done.wait [#allocation3], 1024  }
   0x5   :  { %224 = vsyncadd [#allocation3], 4294966272  ;;  %v190_v0 = vld [vmem:[#allocation2 + $0x38] sm:$0xff]  ;;  %v189_v1 = vld [vmem:[#allocation2 + $0x30] sm:$0xff]  ;;  %v228_v9 = vmov 8.0  }
   0x6   :  { %92 = vmatpush.bf16.msra.mxu0 %v190_v0  ;;  %v188_v2 = vld [vmem:[#allocation2 + $0x28] sm:$0xff]  ;;  %v187_v3 = vld [vmem:[#allocation2 + $0x20] sm:$0xff]  ;;  %v186_v4 = vld [vmem:[#allocation2 + $0x18] sm:$0xff]  ;;  %195 = vrcp.f32 %v228_v9 }
   0x7   :  { %v185_v5 = vld [vmem:[#allocation2 + $0x10] sm:$0xff]  ;;  %v184_v6 = vld [vmem:[#allocation2 + $0x8] sm:$0xff]  ;;  %v183_v7 = vld [vmem:[#allocation2] sm:$0xff] }
   0x8   :  { %v27_v8 = vld [vmem:[%s253_s0] sm:$0xf] }
   0xa   :  { %93 = vmatpush.bf16.msra.mxu0 %v189_v1 }
   0xc   :  { %v196_v10 = vpop.eup %195 }
   0xd   :  { %v112_v11 = vmul.f32 8.0, %v196_v10  ;;  %vm116_vm0 = vweird.f32 %v196_v10 }
   0xe   :  { %94 = vmatpush.bf16.msra.mxu0 %v188_v2 }
   0xf   :  { %v113_v12 = vsub.f32 1.0, %v112_v11 }
  0x11   :  { %v114_v16 = vmul.f32 %v196_v10, %v113_v12 }
  0x12   :  { %95 = vmatpush.bf16.msra.mxu0 %v187_v3 }
  0x13   :  { %v115_v21 = vadd.f32 %v196_v10, %v114_v16 }
  0x15   :  { %v117_v27 = vsel %vm116_vm0, %v196_v10, %v115_v21 }
  0x16   :  { %96 = vmatpush.bf16.msra.mxu0 %v186_v4 }
  0x1a   :  { %97 = vmatpush.bf16.msra.mxu0 %v185_v5 }
  0x1e   :  { %98 = vmatpush.bf16.msra.mxu0 %v184_v6 }
  0x22   :  { %99 = vmatpush.bf16.msra.mxu0 %v183_v7 }
  0x25   :  { %100 = vmatmul.bf16.vlgmr.msra.gmra.mxu0 %v27_v8 }
  0xa2   :  { %v101_v13 = vpop.f32.mrf.mxu0 }
  0xa3   :  { %v105_v14 = vrot.slane %v101_v13, 4  ;;  %v119_v15 = vmul.f32 %v101_v13, %v101_v13 }
  0xa5   :  { %v106_v17 = vadd.f32 %v105_v14, %v101_v13  ;;  %v120_v18 = vrot.slane %v119_v15, 4 }
  0xa7   :  { %v107_v19 = vrot.slane %v106_v17, 2  ;;  %v121_v20 = vadd.f32 %v120_v18, %v119_v15 }
  0xa9   :  { %v108_v22 = vadd.f32 %v107_v19, %v106_v17  ;;  %v122_v23 = vrot.slane %v121_v20, 2 }
  0xaa   :  { %v103_v24 = vpop.f32.mrf.mxu0 }
  0xab   :  { %v109_v25 = vrot.slane %v108_v22, 1  ;;  %v123_v26 = vadd.f32 %v122_v23, %v121_v20 }
  0xad   :  { %v110_v28 = vadd.f32 %v109_v25, %v108_v22  ;;  %v124_v29 = vrot.slane %v123_v26, 1 }
  0xaf   :  { %v118_v30 = vmul.f32 %v117_v27, %v110_v28  ;;  %v125_v31 = vadd.f32 %v124_v29, %v123_v26 }
  0xb1   :  { %v126_v32 = vmul.f32 %v125_v31, %v117_v27  ;;  %v127_v33 = vmul.f32 %v118_v30, %v118_v30  ;;  %v130_v43 = vsub.f32 %v101_v13, %v118_v30 }
  0xb3   :  { %v128_v34 = vsub.f32 %v126_v32, %v127_v33 }
  0xb5   :  { %v129_v35 = vmax.f32 %v128_v34, 0.0 }
  0xb7   :  { %v131_v36 = vadd.f32 1e-05, %v129_v35 }
  0xb9   :  { %197 = vrsqrt.f32 %v131_v36  ;;  %vm138_vm2 = vweird.f32 %v131_v36 }
  0xbf   :  { %v198_v37 = vpop.eup %197 }
  0xc0   :  { %v133_v38 = vmul.f32 %v198_v37, %v131_v36  ;;  %vm139_vm1 = vweird.f32 %v198_v37 }
  0xc1   :  { %vm140_vm3 = vmor %vm138_vm2, %vm139_vm1 }
  0xc2   :  { %v134_v39 = vmul.f32 %v198_v37, %v133_v38 }
  0xc4   :  { %v135_v40 = vmul.f32 0.5, %v134_v39 }
  0xc6   :  { %v136_v41 = vsub.f32 1.5, %v135_v40 }
  0xc8   :  { %v137_v42 = vmul.f32 %v198_v37, %v136_v41 }
  0xca   :  { %v141_v44 = vsel %vm140_vm3, %v198_v37, %v137_v42 }
  0xcb   :  { %v142_v45 = vmul.f32 %v141_v44, %v130_v43 }
  0xcd   :  { %v143_v46 = vmax.f32 %v142_v45, 0.0 }
  0xcf   :  { %v144_v47 = vpack.c.bf16 %v143_v46, %v143_v46 }
  0xd1   :  { %145 = vst [vmem:[%s255_s2] sm:$0xf] %v144_v47 }
  0xd2   :  { %150 = vsyncpa [#allocation3], 1 }

</bundles_post_ra>
